<compile_context>
chip_gen: v7x
topology: tpu7x:2x2x1
jax: 0.10.0
libtpu: 0.0.40
codegen_flags: <defaults>
</compile_context>

<pallas_src>
import jax
import jax.numpy as jnp
from jax.experimental import pallas as pl
from jax.experimental.pallas import tpu as pltpu

LANE = 128      # vreg lane width
SUBLANE = 8     # f32 sublane width
TM_MAX = 512    # max batch-tile rows


def _round_up(x, m):
    return (x + m - 1) // m * m


# ----------------------------------------------------------------------------
# Kernel: one block-diagonal MLP chain on one batch tile, lane-dense output.
# ----------------------------------------------------------------------------
def _make_kernel(n_layers):
    def kernel(x_ref, *refs):
        # refs = (w0, b0, w1, b1, ..., w{n-1}, b{n-1}, out)
        o_ref = refs[-1]
        h = x_ref[...].astype(jnp.float32)
        for i in range(n_layers):
            w = refs[2 * i][...]          # bf16 block-diagonal weight
            b = refs[2 * i + 1][...]      # f32 (1, out) bias
            # bf16 operands -> native MXU path; f32 accumulation.
            h = jnp.dot(h.astype(jnp.bfloat16), w,
                        preferred_element_type=jnp.float32) + b
            if i < n_layers - 1:          # ReLU on hidden layers only
                h = jnp.maximum(h, 0.0)
            # TODO(synk): dropout is identity (p=0.0 / eval) -> omitted.
        # Single full-block, 128-aligned, unmasked store.
        o_ref[...] = h.astype(o_ref.dtype)
    return kernel


# ----------------------------------------------------------------------------
# Parameter packing helpers (all done ONCE in the wrapper, outside the kernel).
# ----------------------------------------------------------------------------
def _pad_depth(weights, biases, target_n):
    """Extend a chain to target_n layers by inserting identity layers right
    before the final Linear. ReLU is idempotent on the (already nonnegative)
    hidden activation, so the function computed is unchanged."""
    n = len(weights)
    if n == target_n:
        return list(weights), list(biases)
    assert n >= 2, "TODO(synk): depth padding of a single-layer MLP unsupported"
    d = weights[-1].shape[0]              # width of the last hidden activation
    eye = jnp.eye(d, dtype=weights[0].dtype)
    zb = jnp.zeros((d,), dtype=biases[0].dtype)
    ws = list(weights[:-1]) + [eye] * (target_n - n) + [weights[-1]]
    bs = list(biases[:-1]) + [zb] * (target_n - n) + [biases[-1]]
    return ws, bs


def _block_diag(w1, w2):
    """Exact block-diagonal combine (off-diagonal blocks are true zeros)."""
    d1i, d1o = w1.shape
    d2i, d2o = w2.shape
    top = jnp.concatenate([w1, jnp.zeros((d1i, d2o), w1.dtype)], axis=1)
    bot = jnp.concatenate([jnp.zeros((d2i, d1o), w2.dtype), w2], axis=1)
    return jnp.concatenate([top, bot], axis=0)


# ----------------------------------------------------------------------------
# Wrapper: packing, padding, specs, single fused pallas_call, unpadding.
# ----------------------------------------------------------------------------
def measure_f_forward(x1, x2, phi_params, psi_params):
    w1, b1 = phi_params
    w2, b2 = psi_params
    n_layers = max(len(w1), len(w2))
    w1, b1 = _pad_depth(w1, b1, n_layers)
    w2, b2 = _pad_depth(w2, b2, n_layers)

    batch = x1.shape[0]
    lat1 = w1[-1].shape[1]
    lat2 = w2[-1].shape[1]

    # ---- block-diagonal, 128-lane padded, bf16 weights / f32 biases ----
    ws, bs = [], []
    for i in range(n_layers):
        w = _block_diag(w1[i], w2[i])
        b = jnp.concatenate([b1[i], b2[i]])
        in_p = _round_up(w.shape[0], LANE)
        out_p = _round_up(w.shape[1], LANE)
        w = jnp.pad(w, ((0, in_p - w.shape[0]), (0, out_p - w.shape[1])))
        b = jnp.pad(b.reshape(1, -1), ((0, 0), (0, out_p - b.shape[0])))
        ws.append(w.astype(jnp.bfloat16))
        bs.append(b.astype(jnp.float32))
    in_p = ws[0].shape[0]
    out_p = ws[-1].shape[1]

    # ---- batch-tile selection ----
    batch_p = _round_up(batch, SUBLANE)
    if batch_p >= 2 * TM_MAX:
        TM = TM_MAX                                   # big batch: 512-row tiles
    elif batch_p > SUBLANE:
        TM = _round_up(pl.cdiv(batch_p, 2), SUBLANE)  # >=2 steps (v7x megacore)
    else:
        TM = batch_p                                  # tiny batch: one tile
    batch_p = _round_up(batch_p, TM)
    grid = (batch_p // TM,)

    xcat = jnp.concatenate([x1, x2], axis=1)
    xcat = jnp.pad(xcat, ((0, batch_p - batch), (0, in_p - xcat.shape[1])))

    operands = [xcat]
    for w, b in zip(ws, bs):
        operands += [w, b]

    in_specs = [pl.BlockSpec((TM, in_p), lambda i: (i, 0))]
    for op in operands[1:]:
        # Full-array blocks with constant index -> VMEM-resident across steps.
        in_specs.append(pl.BlockSpec(op.shape, lambda i: (0, 0)))
    out_spec = pl.BlockSpec((TM, out_p), lambda i: (i, 0))

    flops = sum(2 * batch_p * w.shape[0] * w.shape[1] for w in ws)
    bytes_accessed = sum(int(o.size) * o.dtype.itemsize for o in operands)
    bytes_accessed += batch_p * out_p * x1.dtype.itemsize

    out = pl.pallas_call(
        _make_kernel(n_layers),
        grid=grid,
        in_specs=in_specs,
        out_specs=out_spec,
        out_shape=jax.ShapeDtypeStruct((batch_p, out_p), x1.dtype),
        compiler_params=pltpu.CompilerParams(
            dimension_semantics=("parallel",)),
        cost_estimate=pl.CostEstimate(
            flops=flops, transcendentals=0, bytes_accessed=bytes_accessed),
    )(*operands)

    # Slice the real (unpadded) outputs back out in plain XLA.
    y1 = out[:batch, :lat1]
    y2 = out[:batch, lat1:lat1 + lat2]
    return y1, y2


# ----------------------------------------------------------------------------
# Parameter construction (deterministic, mimics nn.Linear default init).
# ----------------------------------------------------------------------------
def init_mlp_params(key, input_d, structure, output_d):
    struc = [input_d] + list(structure) + [output_d]
    weights, biases = [], []
    for i in range(len(struc) - 1):
        key, kw, kb = jax.random.split(key, 3)
        fan_in, fan_out = struc[i], struc[i + 1]
        bound = 1.0 / jnp.sqrt(jnp.float32(fan_in))
        # Stored as (in, out) so the kernel does h @ W + b.
        w = jax.random.uniform(kw, (fan_in, fan_out), jnp.float32,
                               minval=-bound, maxval=bound)
        b = jax.random.uniform(kb, (fan_out,), jnp.float32,
                               minval=-bound, maxval=bound)
        weights.append(w)
        biases.append(b)
    return weights, biases


# Pure-JAX (f32) reference for correctness check.
def mlp_ref(x, weights, biases):
    h = x
    for i, (w, b) in enumerate(zip(weights, biases)):
        h = h @ w + b
        if i < len(weights) - 1:
            h = jnp.maximum(h, 0.0)
    return h


if __name__ == "__main__":
    key = jax.random.PRNGKey(0)

    # Small shapes consistent with Measure_F(view1_dim, view2_dim, phi_size, psi_size)
    batch = 8
    view1_dim, view2_dim = 32, 16
    phi_size = [64, 32]
    psi_size = [48, 24]
    latent_dim = 1

    k_x1, k_x2, k_phi, k_psi = jax.random.split(key, 4)
    x1 = jax.random.normal(k_x1, (batch, view1_dim), jnp.float32)
    x2 = jax.random.normal(k_x2, (batch, view2_dim), jnp.float32)

    phi_params = init_mlp_params(k_phi, view1_dim, phi_size, latent_dim)
    psi_params = init_mlp_params(k_psi, view2_dim, psi_size, latent_dim)

    fwd = jax.jit(measure_f_forward)
    y1, y2 = fwd(x1, x2, phi_params, psi_params)
    jax.block_until_ready((y1, y2))

    # Sanity check against pure-JAX f32 reference (kernel matmuls are bf16
    # with f32 accumulation, so the tolerance is loosened accordingly).
    y1_ref = mlp_ref(x1, *phi_params)
    y2_ref = mlp_ref(x2, *psi_params)
    assert y1.shape == (batch, latent_dim) and y2.shape == (batch, latent_dim)
    assert jnp.allclose(y1, y1_ref, atol=5e-2, rtol=5e-2)
    assert jnp.allclose(y2, y2_ref, atol=5e-2, rtol=5e-2)

    print("KERNEL_OK")
</pallas_src>

<mosaic_0001>
module attributes {stable_mosaic.version = 11 : i64} {
  func.func @kernel(%arg0: i32, %arg1: memref<8x128xf32, #tpu.memory_space<vmem>>, %arg2: memref<128x128xbf16, #tpu.memory_space<vmem>>, %arg3: memref<1x128xf32, #tpu.memory_space<vmem>>, %arg4: memref<128x128xbf16, #tpu.memory_space<vmem>>, %arg5: memref<1x128xf32, #tpu.memory_space<vmem>>, %arg6: memref<128x128xbf16, #tpu.memory_space<vmem>>, %arg7: memref<1x128xf32, #tpu.memory_space<vmem>>, %arg8: memref<8x128xf32, #tpu.memory_space<vmem>>) attributes {dimension_semantics = [#tpu.dimension_semantics<parallel>], iteration_bounds = array<i64: 1>, scalar_prefetch = 0 : i64, scratch_operands = 0 : i64, tpu.core_type = #tpu.core_type<tc>, window_params = [{transform_indices = @transform_0, window_bounds = array<i64: 8, 128>}, {pipeline_mode = #tpu.pipeline_mode<synchronous>, transform_indices = @transform_1, window_bounds = array<i64: 128, 128>}, {pipeline_mode = #tpu.pipeline_mode<synchronous>, transform_indices = @transform_2, window_bounds = array<i64: 1, 128>}, {pipeline_mode = #tpu.pipeline_mode<synchronous>, transform_indices = @transform_3, window_bounds = array<i64: 128, 128>}, {pipeline_mode = #tpu.pipeline_mode<synchronous>, transform_indices = @transform_4, window_bounds = array<i64: 1, 128>}, {pipeline_mode = #tpu.pipeline_mode<synchronous>, transform_indices = @transform_5, window_bounds = array<i64: 128, 128>}, {pipeline_mode = #tpu.pipeline_mode<synchronous>, transform_indices = @transform_6, window_bounds = array<i64: 1, 128>}, {transform_indices = @transform_7, window_bounds = array<i64: 8, 128>}]} {
    %c0 = arith.constant 0 : index
    %c0_0 = arith.constant 0 : index
    %0 = vector.load %arg1[%c0, %c0_0] : memref<8x128xf32, #tpu.memory_space<vmem>>, vector<8x128xf32>
    %c0_1 = arith.constant 0 : index
    %c0_2 = arith.constant 0 : index
    %1 = vector.load %arg2[%c0_1, %c0_2] : memref<128x128xbf16, #tpu.memory_space<vmem>>, vector<128x128xbf16>
    %c0_3 = arith.constant 0 : index
    %c0_4 = arith.constant 0 : index
    %2 = vector.load %arg3[%c0_3, %c0_4] : memref<1x128xf32, #tpu.memory_space<vmem>>, vector<1x128xf32>
    %3 = arith.truncf %0 : vector<8x128xf32> to vector<8x128xbf16>
    %cst = arith.constant dense<0.000000e+00> : vector<8x128xf32>
    %4 = tpu.matmul %3, %1, %cst {dimension_numbers = #tpu.dot_dimension_numbers<[1], [0], [0], [1], [0, 0, 1, 1], [], []>} : vector<8x128xbf16>, vector<128x128xbf16>, vector<8x128xf32> -> vector<8x128xf32>
    %5 = vector.broadcast %2 : vector<1x128xf32> to vector<8x128xf32>
    %6 = arith.addf %4, %5 : vector<8x128xf32>
    %cst_5 = arith.constant 0.000000e+00 : f32
    %7 = vector.broadcast %cst_5 : f32 to vector<8x128xf32>
    %8 = arith.maximumf %6, %7 : vector<8x128xf32>
    %c0_6 = arith.constant 0 : index
    %c0_7 = arith.constant 0 : index
    %9 = vector.load %arg4[%c0_6, %c0_7] : memref<128x128xbf16, #tpu.memory_space<vmem>>, vector<128x128xbf16>
    %c0_8 = arith.constant 0 : index
    %c0_9 = arith.constant 0 : index
    %10 = vector.load %arg5[%c0_8, %c0_9] : memref<1x128xf32, #tpu.memory_space<vmem>>, vector<1x128xf32>
    %11 = arith.truncf %8 : vector<8x128xf32> to vector<8x128xbf16>
    %cst_10 = arith.constant dense<0.000000e+00> : vector<8x128xf32>
    %12 = tpu.matmul %11, %9, %cst_10 {dimension_numbers = #tpu.dot_dimension_numbers<[1], [0], [0], [1], [0, 0, 1, 1], [], []>} : vector<8x128xbf16>, vector<128x128xbf16>, vector<8x128xf32> -> vector<8x128xf32>
    %13 = vector.broadcast %10 : vector<1x128xf32> to vector<8x128xf32>
    %14 = arith.addf %12, %13 : vector<8x128xf32>
    %cst_11 = arith.constant 0.000000e+00 : f32
    %15 = vector.broadcast %cst_11 : f32 to vector<8x128xf32>
    %16 = arith.maximumf %14, %15 : vector<8x128xf32>
    %c0_12 = arith.constant 0 : index
    %c0_13 = arith.constant 0 : index
    %17 = vector.load %arg6[%c0_12, %c0_13] : memref<128x128xbf16, #tpu.memory_space<vmem>>, vector<128x128xbf16>
    %c0_14 = arith.constant 0 : index
    %c0_15 = arith.constant 0 : index
    %18 = vector.load %arg7[%c0_14, %c0_15] : memref<1x128xf32, #tpu.memory_space<vmem>>, vector<1x128xf32>
    %19 = arith.truncf %16 : vector<8x128xf32> to vector<8x128xbf16>
    %cst_16 = arith.constant dense<0.000000e+00> : vector<8x128xf32>
    %20 = tpu.matmul %19, %17, %cst_16 {dimension_numbers = #tpu.dot_dimension_numbers<[1], [0], [0], [1], [0, 0, 1, 1], [], []>} : vector<8x128xbf16>, vector<128x128xbf16>, vector<8x128xf32> -> vector<8x128xf32>
    %21 = vector.broadcast %18 : vector<1x128xf32> to vector<8x128xf32>
    %22 = arith.addf %20, %21 : vector<8x128xf32>
    %c0_17 = arith.constant 0 : index
    %c0_18 = arith.constant 0 : index
    %23 = vector.load %arg8[%c0_17, %c0_18] : memref<8x128xf32, #tpu.memory_space<vmem>>, vector<8x128xf32>
    tpu.vector_store %arg8[%c0_17, %c0_18], %22 {strides = array<i32>} : memref<8x128xf32, #tpu.memory_space<vmem>>, vector<8x128xf32>,
    return
  }
  func.func @transform_0(%arg0: i32) -> (i32, i32) {
    %c0_i32 = arith.constant 0 : i32
    %c0_i32_0 = arith.constant 0 : i32
    return %arg0, %c0_i32 : i32, i32
  }
  func.func @transform_1(%arg0: i32) -> (i32, i32) {
    %c0_i32 = arith.constant 0 : i32
    %c0_i32_0 = arith.constant 0 : i32
    %c0_i32_1 = arith.constant 0 : i32
    return %c0_i32, %c0_i32_0 : i32, i32
  }
  func.func @transform_2(%arg0: i32) -> (i32, i32) {
    %c0_i32 = arith.constant 0 : i32
    %c0_i32_0 = arith.constant 0 : i32
    %c0_i32_1 = arith.constant 0 : i32
    return %c0_i32, %c0_i32_0 : i32, i32
  }
  func.func @transform_3(%arg0: i32) -> (i32, i32) {
    %c0_i32 = arith.constant 0 : i32
    %c0_i32_0 = arith.constant 0 : i32
    %c0_i32_1 = arith.constant 0 : i32
    return %c0_i32, %c0_i32_0 : i32, i32
  }
  func.func @transform_4(%arg0: i32) -> (i32, i32) {
    %c0_i32 = arith.constant 0 : i32
    %c0_i32_0 = arith.constant 0 : i32
    %c0_i32_1 = arith.constant 0 : i32
    return %c0_i32, %c0_i32_0 : i32, i32
  }
  func.func @transform_5(%arg0: i32) -> (i32, i32) {
    %c0_i32 = arith.constant 0 : i32
    %c0_i32_0 = arith.constant 0 : i32
    %c0_i32_1 = arith.constant 0 : i32
    return %c0_i32, %c0_i32_0 : i32, i32
  }
  func.func @transform_6(%arg0: i32) -> (i32, i32) {
    %c0_i32 = arith.constant 0 : i32
    %c0_i32_0 = arith.constant 0 : i32
    %c0_i32_1 = arith.constant 0 : i32
    return %c0_i32, %c0_i32_0 : i32, i32
  }
  func.func @transform_7(%arg0: i32) -> (i32, i32) {
    %c0_i32 = arith.constant 0 : i32
    %c0_i32_0 = arith.constant 0 : i32
    return %arg0, %c0_i32 : i32, i32
  }
}

</mosaic_0001>

<bundles_post_ra>
// kernel: measure_f_forward.1
= control target key start
LH: loop header
LB: loop body
LE: loop exit
PB: predicated region body
PF: predicated region fallthrough
CT: control target
= control target key end

     0   :  { %v511_v0 = vmov 0.0   ;;  %vm512_vm0 = vmmov 0   ;;  %s670_s1 = inlined_call_operand.vmem [shape: bf16[128,128], index: 1, kind: input, shape index: {}]   ;;  %s671_s3 = inlined_call_operand.vmem [shape: bf16[128,128], index: 3, kind: input, shape index: {}]   ;;  %s672_s0 = inlined_call_operand.vmem [shape: f32[8,128], index: 0, kind: input, shape index: {}]   ;;  %s673_s5 = inlined_call_operand.vmem [shape: bf16[128,128], index: 5, kind: input, shape index: {}]   ;;  %s674_s2 = inlined_call_operand.vmem [shape: f32[1,128], index: 2, kind: input, shape index: {}]   ;;  %s675_s4 = inlined_call_operand.vmem [shape: f32[1,128], index: 4, kind: input, shape index: {}]   ;;  %s676_s6 = inlined_call_operand.vmem [shape: f32[1,128], index: 6, kind: input, shape index: {}]   ;;  %s677_s7 = inlined_call_operand.vmem [shape: f32[8,128], index: 7, kind: output, shape index: {}]  }
   0x1   :  { %425 = vmatprep.subr.bf16.mxu0 %v511_v0  ;;  %v487_v1 = vld [vmem:[%s670_s1] sm:$0xff]   ;;  %441 = vmatprep.mubr.msk.bf16.mxu0 %vm512_vm0, %v511_v0  ;;  %v488_v2 = vld [vmem:[%s670_s1 + $0x8] sm:$0xff]   ;;  %v489_v3 = vld [vmem:[%s670_s1 + $0x10] sm:$0xff]  }
   0x2   :  { %445 = vmatprep.subr.bf16.mxu1 %v511_v0  ;;  %461 = vmatprep.mubr.msk.bf16.mxu1 %vm512_vm0, %v511_v0  ;;  %v495_v4 = vld [vmem:[%s671_s3] sm:$0xff]   ;;  %v490_v5 = vld [vmem:[%s670_s1 + $0x18] sm:$0xff]   ;;  %v496_v6 = vld [vmem:[%s671_s3 + $0x8] sm:$0xff]  }
   0x3   :  { %426 = vmatpush3.bf16.msra.mxu0 %v487_v1  ;;  %446 = vmatpush3.bf16.msra.mxu1 %v495_v4  ;;  %v491_v7 = vld [vmem:[%s670_s1 + $0x20] sm:$0xff]   ;;  %v497_v8 = vld [vmem:[%s671_s3 + $0x10] sm:$0xff]   ;;  %v492_v9 = vld [vmem:[%s670_s1 + $0x28] sm:$0xff]  }
   0x4   :  { %427 = vmatprep.subr.bf16.mxu0 %v511_v0  ;;  %447 = vmatprep.subr.bf16.mxu1 %v511_v0  ;;  %v498_v10 = vld [vmem:[%s671_s3 + $0x18] sm:$0xff]   ;;  %v493_v11 = vld [vmem:[%s670_s1 + $0x30] sm:$0xff]   ;;  %v499_v12 = vld [vmem:[%s671_s3 + $0x20] sm:$0xff]  }
   0x5   :  { %v494_v13 = vld [vmem:[%s670_s1 + $0x38] sm:$0xff]   ;;  %v27_v14 = vld [vmem:[%s672_s0] sm:$0xff]  ;;  %v500_v15 = vld [vmem:[%s671_s3 + $0x28] sm:$0xff]  }
   0x6   :  { %v45_v16 = vpack.c.bf16 %v27_v14, %v27_v14  ;;  %v501_v17 = vld [vmem:[%s671_s3 + $0x30] sm:$0xff]   ;;  %v502_v18 = vld [vmem:[%s671_s3 + $0x38] sm:$0xff]   ;;  %v503_v19 = vld [vmem:[%s673_s5] sm:$0xff]  }
   0x7   :  { %428 = vmatpush3.bf16.msra.mxu0 %v488_v2  ;;  %448 = vmatpush3.bf16.msra.mxu1 %v496_v6  ;;  %v504_v20 = vld [vmem:[%s673_s5 + $0x8] sm:$0xff]   ;;  %v505_v21 = vld [vmem:[%s673_s5 + $0x10] sm:$0xff]   ;;  %v506_v22 = vld [vmem:[%s673_s5 + $0x18] sm:$0xff]  }
   0x8   :  { %429 = vmatprep.subr.bf16.mxu0 %v511_v0  ;;  %449 = vmatprep.subr.bf16.mxu1 %v511_v0  ;;  %v507_v23 = vld [vmem:[%s673_s5 + $0x20] sm:$0xff]   ;;  %v508_v24 = vld [vmem:[%s673_s5 + $0x28] sm:$0xff]   ;;  %v509_v33 = vld [vmem:[%s673_s5 + $0x30] sm:$0xff]  }
   0x9   :  { %v371_v25 = vld [vmem:[%s674_s2] ss:$0 sm:$0xff]  ;;  %v510_v34 = vld [vmem:[%s673_s5 + $0x38] sm:$0xff]  }
   0xa   :  { %v380_v35 = vld [vmem:[%s675_s4] ss:$0 sm:$0xff] }
   0xb   :  { %430 = vmatpush3.bf16.msra.mxu0 %v489_v3  ;;  %450 = vmatpush3.bf16.msra.mxu1 %v497_v8  ;;  %v389_v43 = vld [vmem:[%s676_s6] ss:$0 sm:$0xff] }
   0xc   :  { %431 = vmatprep.subr.bf16.mxu0 %v511_v0  ;;  %451 = vmatprep.subr.bf16.mxu1 %v511_v0 }
   0xf   :  { %432 = vmatpush3.bf16.msra.mxu0 %v490_v5  ;;  %452 = vmatpush3.bf16.msra.mxu1 %v498_v10 }
  0x10   :  { %433 = vmatprep.subr.bf16.mxu0 %v511_v0  ;;  %453 = vmatprep.subr.bf16.mxu1 %v511_v0 }
  0x13   :  { %434 = vmatpush3.bf16.msra.mxu0 %v491_v7  ;;  %454 = vmatpush3.bf16.msra.mxu1 %v499_v12 }
  0x14   :  { %435 = vmatprep.subr.bf16.mxu0 %v511_v0  ;;  %455 = vmatprep.subr.bf16.mxu1 %v511_v0 }
  0x17   :  { %436 = vmatpush3.bf16.msra.mxu0 %v492_v9  ;;  %456 = vmatpush3.bf16.msra.mxu1 %v500_v15 }
  0x18   :  { %437 = vmatprep.subr.bf16.mxu0 %v511_v0  ;;  %457 = vmatprep.subr.bf16.mxu1 %v511_v0 }
  0x1b   :  { %438 = vmatpush3.bf16.msra.mxu0 %v493_v11  ;;  %458 = vmatpush3.bf16.msra.mxu1 %v501_v17 }
  0x1c   :  { %439 = vmatprep.subr.bf16.mxu0 %v511_v0  ;;  %459 = vmatprep.subr.bf16.mxu1 %v511_v0 }
  0x1f   :  { %440 = vmatpush3.bf16.msra.mxu0 %v494_v13  ;;  %460 = vmatpush3.bf16.msra.mxu1 %v502_v18 }
  0x20   :  { %465 = vmatprep.subr.bf16.mxu0 %v511_v0 }
  0x22   :  { %442 = vmatmul.mubr.bf16.vlgmr.msra.gmra.mrb[0].mxu0 %v45_v16 }
  0x23   :  { %481 = vmatprep.mubr.msk.bf16.mxu0 %vm512_vm0, %v511_v0  ;;  %466 = vmatpush3.bf16.msra.mxu0 %v503_v19 }
  0x24   :  { %467 = vmatprep.subr.bf16.mxu0 %v511_v0 }
  0x27   :  { %468 = vmatpush3.bf16.msra.mxu0 %v504_v20 }
  0x28   :  { %469 = vmatprep.subr.bf16.mxu0 %v511_v0 }
  0x2b   :  { %470 = vmatpush3.bf16.msra.mxu0 %v505_v21 }
  0x2c   :  { %471 = vmatprep.subr.bf16.mxu0 %v511_v0 }
  0x2f   :  { %472 = vmatpush3.bf16.msra.mxu0 %v506_v22 }
  0x30   :  { %473 = vmatprep.subr.bf16.mxu0 %v511_v0 }
  0x33   :  { %474 = vmatpush3.bf16.msra.mxu0 %v507_v23 }
  0x34   :  { %475 = vmatprep.subr.bf16.mxu0 %v511_v0 }
  0x37   :  { %476 = vmatpush3.bf16.msra.mxu0 %v508_v24 }
  0x38   :  { %477 = vmatprep.subr.bf16.mxu0 %v511_v0 }
  0x3b   :  { %478 = vmatpush3.bf16.msra.mxu0 %v509_v33 }
  0x3c   :  { %479 = vmatprep.subr.bf16.mxu0 %v511_v0 }
  0x3f   :  { %480 = vmatpush3.bf16.msra.mxu0 %v510_v34 }
  0xf5   :  { %v134_v26 = vpop.f32.mrb[0].mxu0 }
  0xf6   :  { %v135_v27 = vadd.f32 %v371_v25, %v134_v26  ;;  %v443_v28 = vpop.f32.mrb[1].mxu0 }
  0xf7   :  { %v137_v29 = vpop.f32.mrb[2].mxu0 }
  0xf8   :  { %v140_v30 = vmax.f32 %v135_v27, 0.0  ;;  %v444_v31 = vpop.f32.mrb[3].mxu0 }
  0xfa   :  { %v158_v32 = vpack.c.bf16 %v140_v30, %v140_v30 }
  0xfc   :  { %462 = vmatmul.mubr.bf16.vlgmr.msra.gmra.mrb[0].mxu1 %v158_v32 }
 0x1cf   :  { %v247_v36 = vpop.f32.mrb[0].mxu1 }
 0x1d0   :  { %v248_v37 = vadd.f32 %v380_v35, %v247_v36  ;;  %v463_v38 = vpop.f32.mrb[1].mxu1 }
 0x1d1   :  { %v250_v39 = vpop.f32.mrb[2].mxu1 }
 0x1d2   :  { %v253_v40 = vmax.f32 %v248_v37, 0.0  ;;  %v464_v41 = vpop.f32.mrb[3].mxu1 }
 0x1d4   :  { %v271_v42 = vpack.c.bf16 %v253_v40, %v253_v40 }
 0x1d6   :  { %482 = vmatmul.mubr.bf16.vlgmr.msra.gmra.mrb[4].mxu0 %v271_v42 }
 0x2a9   :  { %v360_v44 = vpop.f32.mrb[4].mxu0 }
 0x2aa   :  { %v361_v45 = vadd.f32 %v389_v43, %v360_v44  ;;  %v483_v46 = vpop.f32.mrb[5].mxu0 }
 0x2ab   :  { %v363_v47 = vpop.f32.mrb[6].mxu0 }
 0x2ac   :  { %366 = vst [vmem:[%s677_s7] sm:$0xff] %v361_v45  ;;  %v484_v48 = vpop.f32.mrb[7].mxu0 }

</bundles_post_ra>
